<compile_context>
chip_gen: v7x
topology: tpu7x:2x2x1
jax: 0.10.0
libtpu: 0.0.40
codegen_flags: <defaults>
</compile_context>

<pallas_src>
import jax
import jax.numpy as jnp
import numpy as np
from jax import lax
from jax.experimental import pallas as pl
from jax.experimental.pallas import tpu as pltpu


def _residual_block_kernel(x_ref, s1_ref, b1_ref, t1_ref, b2_ref, t2_ref, o_ref):
    # x_ref  : (B, H, W*C) f32   B images, W and C flattened onto the lane axis
    # s1/b1  : (1, W*C)    f32   folded BN1 scale/bias, tiled over W
    # t1/t2  : (3, W*C, W*C) bf16 per-dy banded conv matrices (BN2 scale folded in t1)
    # b2     : (1, W*C)    f32   folded BN2 bias, tiled over W
    # o_ref  : (B, H, W*C) f32
    B, H, WC = x_ref.shape
    BH = B * H

    x2d = x_ref[...].reshape(BH, WC)                       # lane-dense (BH, WC)

    # Per-image top/bottom row masks for the vertical conv taps (batch-flattened):
    # rolling the flattened activations by +/-1 row wraps one row across the image
    # (and batch) boundary; that row must contribute zero (SAME padding).
    row = lax.broadcasted_iota(jnp.int32, (BH, WC), 0)
    is_top = (row % H) == 0
    is_bot = (row % H) == (H - 1)

    def conv3x3(h, t_ref):
        # out[r, :] = sum_dy operand_dy[r, :] @ T[dy], operand_dy[r] = h[r + dy - 1]
        # (zero outside the image).  Rolls run on the XLU; masked f32 values are
        # cast to bf16 so the MXU runs at native rate with f32 accumulation.
        h_prev = jnp.where(is_top, 0.0,
                           pltpu.roll(h, shift=1, axis=0)).astype(jnp.bfloat16)
        h_mid = h.astype(jnp.bfloat16)
        h_next = jnp.where(is_bot, 0.0,
                           pltpu.roll(h, shift=BH - 1, axis=0)).astype(jnp.bfloat16)
        acc = jnp.dot(h_prev, t_ref[0], preferred_element_type=jnp.float32)
        acc = acc + jnp.dot(h_mid, t_ref[1], preferred_element_type=jnp.float32)
        acc = acc + jnp.dot(h_next, t_ref[2], preferred_element_type=jnp.float32)
        return acc                                          # (BH, WC) f32

    # BN1 (folded running stats) + ReLU (f32 VPU)
    h = jnp.maximum(x2d * s1_ref[...] + b1_ref[...], 0.0)

    # conv1 (3x3, SAME, no bias); BN2's scale is already folded into t1
    acc1 = conv3x3(h, t1_ref)

    # BN2 bias + ReLU; Dropout2d(p=0) is identity
    g = jnp.maximum(acc1 + b2_ref[...], 0.0)

    # conv2 (3x3, SAME, no bias)
    acc2 = conv3x3(g, t2_ref)

    # residual add + single lane-dense output store
    o_ref[...] = (acc2 + x2d).reshape(B, H, WC)


def prepare_residual_block_params(scale1, bias1, w1_hwio, scale2, bias2, w2_hwio, *, W):
    """Precompute (once, at weight-load time) the banded conv matrices and tiled
    BN scale/bias.  scale/bias: (C,); w: (3,3,C,C) HWIO."""
    C = scale1.shape[0]
    WC = W * C

    s1_t = jnp.tile(scale1.reshape(1, C), (1, W))
    b1_t = jnp.tile(bias1.reshape(1, C), (1, W))
    b2_t = jnp.tile(bias2.reshape(1, C), (1, W))

    # Fold BN2's scale into conv1's output channels (exact by linearity of the conv).
    w1s = w1_hwio * scale2.reshape(1, 1, 1, C)

    # Banded matrices: S[dx, p, xx] selects input column p = xx + dx - 1 (0 outside),
    # so T[dy][p*C+ci, xx*C+co] = sum_dx S[dx,p,xx] * w[dy,dx,ci,co] reproduces the
    # SAME-padded 3x3 conv as 3 matmuls over full activation rows.
    S = np.zeros((3, W, W), np.float32)
    for dx in range(3):
        for xx in range(W):
            p = xx + dx - 1
            if 0 <= p < W:
                S[dx, p, xx] = 1.0
    S = jnp.asarray(S)
    T1 = jnp.einsum('dpx,ydio->ypixo', S, w1s).reshape(3, WC, WC).astype(jnp.bfloat16)
    T2 = jnp.einsum('dpx,ydio->ypixo', S, w2_hwio).reshape(3, WC, WC).astype(jnp.bfloat16)
    return {"s1": s1_t, "b1": b1_t, "T1": T1, "b2": b2_t, "T2": T2}


def _pick_batch_tile(N, H):
    # Target M = B*H ~ 256 rows (fills the MXU on v6e/v7x) but keep >= 2 grid steps
    # when the batch allows it, so v7x's two TensorCores can split the batch axis.
    bt = min(N, max(1, 256 // H))
    if N >= 2:
        bt = max(1, min(bt, N // 2))
    while N % bt != 0:
        bt -= 1
    return bt


def residual_block(x, params, *, batch_tile=None):
    """x: (N,H,W,C) f32 NHWC; params from prepare_residual_block_params. -> (N,H,W,C)."""
    N, H, W, C = x.shape
    WC = W * C
    assert WC % 128 == 0, "lane-dense layout assumes W*C is a multiple of 128"
    B = batch_tile if batch_tile is not None else _pick_batch_tile(N, H)

    x_ld = x.reshape(N, H, WC)

    grid_spec = pltpu.PrefetchScalarGridSpec(
        num_scalar_prefetch=0,
        grid=(N // B,),
        in_specs=[
            pl.BlockSpec((B, H, WC), lambda n: (n, 0, 0)),
            pl.BlockSpec((1, WC), lambda n: (0, 0)),
            pl.BlockSpec((1, WC), lambda n: (0, 0)),
            pl.BlockSpec((3, WC, WC), lambda n: (0, 0, 0)),
            pl.BlockSpec((1, WC), lambda n: (0, 0)),
            pl.BlockSpec((3, WC, WC), lambda n: (0, 0, 0)),
        ],
        out_specs=pl.BlockSpec((B, H, WC), lambda n: (n, 0, 0)),
    )
    out_ld = pl.pallas_call(
        _residual_block_kernel,
        out_shape=jax.ShapeDtypeStruct((N, H, WC), jnp.float32),
        grid_spec=grid_spec,
        # no cross-batch dependence: parallel lets v7x shard the batch over its 2 TCs
        compiler_params=pltpu.CompilerParams(dimension_semantics=("parallel",)),
    )(x_ld, params["s1"], params["b1"], params["T1"], params["b2"], params["T2"])
    return out_ld.reshape(N, H, W, C)


if __name__ == "__main__":
    # small shapes consistent with the module: batch=2, channels=8, spatial=16
    N, C, H, W = 2, 8, 16, 16
    key = jax.random.PRNGKey(0)
    ks = jax.random.split(key, 11)

    # PyTorch-style NCHW input, transposed to NHWC for the kernel
    x_nchw = jax.random.normal(ks[0], (N, C, H, W), jnp.float32)
    x = jnp.transpose(x_nchw, (0, 2, 3, 1))

    # conv weights (HWIO layout: kH, kW, C_in, C_out), deterministic init
    w1_hwio = 0.1 * jax.random.normal(ks[1], (3, 3, C, C), jnp.float32)
    w2_hwio = 0.1 * jax.random.normal(ks[2], (3, 3, C, C), jnp.float32)

    # BatchNorm params + running stats (eval mode), deterministic init
    eps = 1e-5
    gamma1 = 1.0 + 0.1 * jax.random.normal(ks[3], (C,), jnp.float32)
    beta1 = 0.1 * jax.random.normal(ks[4], (C,), jnp.float32)
    mean1 = 0.1 * jax.random.normal(ks[5], (C,), jnp.float32)
    var1 = jax.random.uniform(ks[6], (C,), jnp.float32, 0.5, 1.5)
    gamma2 = 1.0 + 0.1 * jax.random.normal(ks[7], (C,), jnp.float32)
    beta2 = 0.1 * jax.random.normal(ks[8], (C,), jnp.float32)
    mean2 = 0.1 * jax.random.normal(ks[9], (C,), jnp.float32)
    var2 = jax.random.uniform(ks[10], (C,), jnp.float32, 0.5, 1.5)

    # fold BN into per-channel scale/bias (eval-mode semantics)
    s1 = gamma1 / jnp.sqrt(var1 + eps)
    b1 = beta1 - mean1 * s1
    s2 = gamma2 / jnp.sqrt(var2 + eps)
    b2 = beta2 - mean2 * s2

    # precompute banded conv matrices / tiled BN params once (weight-load time)
    params = prepare_residual_block_params(s1, b1, w1_hwio, s2, b2, w2_hwio, W=W)

    out = residual_block(x, params)
    out = jax.block_until_ready(out)

    # pure-JAX f32 reference for correctness
    def ref(xv):
        h = jnp.maximum(xv * s1 + b1, 0.0)
        c1 = lax.conv_general_dilated(h, w1_hwio, (1, 1), "SAME",
                                      dimension_numbers=("NHWC", "HWIO", "NHWC"))
        g = jnp.maximum(c1 * s2 + b2, 0.0)
        c2 = lax.conv_general_dilated(g, w2_hwio, (1, 1), "SAME",
                                      dimension_numbers=("NHWC", "HWIO", "NHWC"))
        return c2 + xv

    expected = jax.block_until_ready(ref(x))
    assert out.shape == (N, H, W, C)
    # bf16 MXU operands with f32 accumulation -> relaxed tolerance vs f32 reference
    assert np.allclose(np.asarray(out), np.asarray(expected), atol=3e-2, rtol=3e-2)
    print("KERNEL_OK")
</pallas_src>

<mosaic_0001>
module attributes {stable_mosaic.version = 11 : i64} {
  func.func @_residual_block_kernel(%arg0: i32, %arg1: memref<1x16x128xf32, #tpu.memory_space<vmem>>, %arg2: memref<1x128xf32, #tpu.memory_space<vmem>>, %arg3: memref<1x128xf32, #tpu.memory_space<vmem>>, %arg4: memref<3x128x128xbf16, #tpu.memory_space<vmem>>, %arg5: memref<1x128xf32, #tpu.memory_space<vmem>>, %arg6: memref<3x128x128xbf16, #tpu.memory_space<vmem>>, %arg7: memref<1x16x128xf32, #tpu.memory_space<vmem>>) attributes {dimension_semantics = [#tpu.dimension_semantics<parallel>], iteration_bounds = array<i64: 2>, scalar_prefetch = 0 : i64, scratch_operands = 0 : i64, tpu.core_type = #tpu.core_type<tc>, window_params = [{transform_indices = @transform_0, window_bounds = array<i64: 1, 16, 128>}, {pipeline_mode = #tpu.pipeline_mode<synchronous>, transform_indices = @transform_1, window_bounds = array<i64: 1, 128>}, {pipeline_mode = #tpu.pipeline_mode<synchronous>, transform_indices = @transform_2, window_bounds = array<i64: 1, 128>}, {pipeline_mode = #tpu.pipeline_mode<synchronous>, transform_indices = @transform_3, window_bounds = array<i64: 3, 128, 128>}, {pipeline_mode = #tpu.pipeline_mode<synchronous>, transform_indices = @transform_4, window_bounds = array<i64: 1, 128>}, {pipeline_mode = #tpu.pipeline_mode<synchronous>, transform_indices = @transform_5, window_bounds = array<i64: 3, 128, 128>}, {transform_indices = @transform_6, window_bounds = array<i64: 1, 16, 128>}]} {
    %c0 = arith.constant 0 : index
    %c0_0 = arith.constant 0 : index
    %c0_1 = arith.constant 0 : index
    %0 = vector.load %arg1[%c0, %c0_0, %c0_1] : memref<1x16x128xf32, #tpu.memory_space<vmem>>, vector<1x16x128xf32>
    %1 = vector.shape_cast %0 : vector<1x16x128xf32> to vector<16x128xf32>
    %2 = tpu.iota {dimensions = array<i32: 0>} : vector<16x128xi32>
    %c16_i32 = arith.constant 16 : i32
    %c0_i32 = arith.constant 0 : i32
    %3 = arith.cmpi eq, %c16_i32, %c0_i32 : i32
    %c1_i32 = arith.constant 1 : i32
    %4 = arith.select %3, %c1_i32, %c16_i32 : i32
    %5 = vector.broadcast %4 : i32 to vector<16x128xi32>
    %6 = arith.remsi %2, %5 : vector<16x128xi32>
    %c0_i32_2 = arith.constant 0 : i32
    %7 = vector.broadcast %c0_i32_2 : i32 to vector<16x128xi32>
    %8 = arith.cmpi ne, %6, %7 : vector<16x128xi32>
    %c0_i32_3 = arith.constant 0 : i32
    %9 = vector.broadcast %c0_i32_3 : i32 to vector<16x128xi32>
    %10 = arith.cmpi slt, %6, %9 : vector<16x128xi32>
    %c0_i32_4 = arith.constant 0 : i32
    %11 = arith.cmpi slt, %4, %c0_i32_4 : i32
    %12 = vector.broadcast %11 : i1 to vector<16x128xi1>
    %13 = vector.broadcast %12 : vector<16x128xi1> to vector<16x128xi1>
    %14 = arith.xori %10, %13 : vector<16x128xi1>
    %15 = arith.andi %14, %8 : vector<16x128xi1>
    %16 = vector.broadcast %4 : i32 to vector<16x128xi32>
    %17 = arith.addi %6, %16 : vector<16x128xi32>
    %18 = arith.select %15, %17, %6 : vector<16x128xi1>, vector<16x128xi32>
    %c0_i32_5 = arith.constant 0 : i32
    %19 = vector.broadcast %c0_i32_5 : i32 to vector<16x128xi32>
    %20 = arith.cmpi eq, %18, %19 : vector<16x128xi32>
    %c16_i32_6 = arith.constant 16 : i32
    %c0_i32_7 = arith.constant 0 : i32
    %21 = arith.cmpi eq, %c16_i32_6, %c0_i32_7 : i32
    %c1_i32_8 = arith.constant 1 : i32
    %22 = arith.select %21, %c1_i32_8, %c16_i32_6 : i32
    %23 = vector.broadcast %22 : i32 to vector<16x128xi32>
    %24 = arith.remsi %2, %23 : vector<16x128xi32>
    %c0_i32_9 = arith.constant 0 : i32
    %25 = vector.broadcast %c0_i32_9 : i32 to vector<16x128xi32>
    %26 = arith.cmpi ne, %24, %25 : vector<16x128xi32>
    %c0_i32_10 = arith.constant 0 : i32
    %27 = vector.broadcast %c0_i32_10 : i32 to vector<16x128xi32>
    %28 = arith.cmpi slt, %24, %27 : vector<16x128xi32>
    %c0_i32_11 = arith.constant 0 : i32
    %29 = arith.cmpi slt, %22, %c0_i32_11 : i32
    %30 = vector.broadcast %29 : i1 to vector<16x128xi1>
    %31 = vector.broadcast %30 : vector<16x128xi1> to vector<16x128xi1>
    %32 = arith.xori %28, %31 : vector<16x128xi1>
    %33 = arith.andi %32, %26 : vector<16x128xi1>
    %34 = vector.broadcast %22 : i32 to vector<16x128xi32>
    %35 = arith.addi %24, %34 : vector<16x128xi32>
    %36 = arith.select %33, %35, %24 : vector<16x128xi1>, vector<16x128xi32>
    %c15_i32 = arith.constant 15 : i32
    %37 = vector.broadcast %c15_i32 : i32 to vector<16x128xi32>
    %38 = arith.cmpi eq, %36, %37 : vector<16x128xi32>
    %c0_12 = arith.constant 0 : index
    %c0_13 = arith.constant 0 : index
    %39 = vector.load %arg2[%c0_12, %c0_13] : memref<1x128xf32, #tpu.memory_space<vmem>>, vector<1x128xf32>
    %40 = vector.broadcast %39 : vector<1x128xf32> to vector<16x128xf32>
    %41 = arith.mulf %1, %40 : vector<16x128xf32>
    %c0_14 = arith.constant 0 : index
    %c0_15 = arith.constant 0 : index
    %42 = vector.load %arg3[%c0_14, %c0_15] : memref<1x128xf32, #tpu.memory_space<vmem>>, vector<1x128xf32>
    %43 = vector.broadcast %42 : vector<1x128xf32> to vector<16x128xf32>
    %44 = arith.addf %41, %43 : vector<16x128xf32>
    %cst = arith.constant 0.000000e+00 : f32
    %45 = vector.broadcast %cst : f32 to vector<16x128xf32>
    %46 = arith.maximumf %44, %45 : vector<16x128xf32>
    %c1_i32_16 = arith.constant 1 : i32
    %47 = tpu.dynamic_rotate %46 by %c1_i32_16 dim 0 : vector<16x128xf32>, i32 -> vector<16x128xf32>
    %cst_17 = arith.constant 0.000000e+00 : f32
    %48 = vector.broadcast %cst_17 : f32 to vector<16x128xf32>
    %49 = arith.select %20, %48, %47 : vector<16x128xi1>, vector<16x128xf32>
    %50 = arith.truncf %49 : vector<16x128xf32> to vector<16x128xbf16>
    %51 = arith.truncf %46 : vector<16x128xf32> to vector<16x128xbf16>
    %c15_i32_18 = arith.constant 15 : i32
    %52 = tpu.dynamic_rotate %46 by %c15_i32_18 dim 0 : vector<16x128xf32>, i32 -> vector<16x128xf32>
    %cst_19 = arith.constant 0.000000e+00 : f32
    %53 = vector.broadcast %cst_19 : f32 to vector<16x128xf32>
    %54 = arith.select %38, %53, %52 : vector<16x128xi1>, vector<16x128xf32>
    %55 = arith.truncf %54 : vector<16x128xf32> to vector<16x128xbf16>
    %c0_20 = arith.constant 0 : index
    %c0_21 = arith.constant 0 : index
    %c0_22 = arith.constant 0 : index
    %56 = vector.load %arg4[%c0_20, %c0_21, %c0_22] : memref<3x128x128xbf16, #tpu.memory_space<vmem>>, vector<1x128x128xbf16>
    %57 = vector.shape_cast %56 : vector<1x128x128xbf16> to vector<128x128xbf16>
    %cst_23 = arith.constant dense<0.000000e+00> : vector<16x128xf32>
    %58 = tpu.matmul %50, %57, %cst_23 {dimension_numbers = #tpu.dot_dimension_numbers<[1], [0], [0], [1], [0, 0, 1, 1], [], []>} : vector<16x128xbf16>, vector<128x128xbf16>, vector<16x128xf32> -> vector<16x128xf32>
    %c1 = arith.constant 1 : index
    %c0_24 = arith.constant 0 : index
    %c0_25 = arith.constant 0 : index
    %59 = vector.load %arg4[%c1, %c0_24, %c0_25] : memref<3x128x128xbf16, #tpu.memory_space<vmem>>, vector<1x128x128xbf16>
    %60 = vector.shape_cast %59 : vector<1x128x128xbf16> to vector<128x128xbf16>
    %cst_26 = arith.constant dense<0.000000e+00> : vector<16x128xf32>
    %61 = tpu.matmul %51, %60, %cst_26 {dimension_numbers = #tpu.dot_dimension_numbers<[1], [0], [0], [1], [0, 0, 1, 1], [], []>} : vector<16x128xbf16>, vector<128x128xbf16>, vector<16x128xf32> -> vector<16x128xf32>
    %62 = arith.addf %58, %61 : vector<16x128xf32>
    %c2 = arith.constant 2 : index
    %c0_27 = arith.constant 0 : index
    %c0_28 = arith.constant 0 : index
    %63 = vector.load %arg4[%c2, %c0_27, %c0_28] : memref<3x128x128xbf16, #tpu.memory_space<vmem>>, vector<1x128x128xbf16>
    %64 = vector.shape_cast %63 : vector<1x128x128xbf16> to vector<128x128xbf16>
    %cst_29 = arith.constant dense<0.000000e+00> : vector<16x128xf32>
    %65 = tpu.matmul %55, %64, %cst_29 {dimension_numbers = #tpu.dot_dimension_numbers<[1], [0], [0], [1], [0, 0, 1, 1], [], []>} : vector<16x128xbf16>, vector<128x128xbf16>, vector<16x128xf32> -> vector<16x128xf32>
    %66 = arith.addf %62, %65 : vector<16x128xf32>
    %c0_30 = arith.constant 0 : index
    %c0_31 = arith.constant 0 : index
    %67 = vector.load %arg5[%c0_30, %c0_31] : memref<1x128xf32, #tpu.memory_space<vmem>>, vector<1x128xf32>
    %68 = vector.broadcast %67 : vector<1x128xf32> to vector<16x128xf32>
    %69 = arith.addf %66, %68 : vector<16x128xf32>
    %cst_32 = arith.constant 0.000000e+00 : f32
    %70 = vector.broadcast %cst_32 : f32 to vector<16x128xf32>
    %71 = arith.maximumf %69, %70 : vector<16x128xf32>
    %c1_i32_33 = arith.constant 1 : i32
    %72 = tpu.dynamic_rotate %71 by %c1_i32_33 dim 0 : vector<16x128xf32>, i32 -> vector<16x128xf32>
    %cst_34 = arith.constant 0.000000e+00 : f32
    %73 = vector.broadcast %cst_34 : f32 to vector<16x128xf32>
    %74 = arith.select %20, %73, %72 : vector<16x128xi1>, vector<16x128xf32>
    %75 = arith.truncf %74 : vector<16x128xf32> to vector<16x128xbf16>
    %76 = arith.truncf %71 : vector<16x128xf32> to vector<16x128xbf16>
    %c15_i32_35 = arith.constant 15 : i32
    %77 = tpu.dynamic_rotate %71 by %c15_i32_35 dim 0 : vector<16x128xf32>, i32 -> vector<16x128xf32>
    %cst_36 = arith.constant 0.000000e+00 : f32
    %78 = vector.broadcast %cst_36 : f32 to vector<16x128xf32>
    %79 = arith.select %38, %78, %77 : vector<16x128xi1>, vector<16x128xf32>
    %80 = arith.truncf %79 : vector<16x128xf32> to vector<16x128xbf16>
    %c0_37 = arith.constant 0 : index
    %c0_38 = arith.constant 0 : index
    %c0_39 = arith.constant 0 : index
    %81 = vector.load %arg6[%c0_37, %c0_38, %c0_39] : memref<3x128x128xbf16, #tpu.memory_space<vmem>>, vector<1x128x128xbf16>
    %82 = vector.shape_cast %81 : vector<1x128x128xbf16> to vector<128x128xbf16>
    %cst_40 = arith.constant dense<0.000000e+00> : vector<16x128xf32>
    %83 = tpu.matmul %75, %82, %cst_40 {dimension_numbers = #tpu.dot_dimension_numbers<[1], [0], [0], [1], [0, 0, 1, 1], [], []>} : vector<16x128xbf16>, vector<128x128xbf16>, vector<16x128xf32> -> vector<16x128xf32>
    %c1_41 = arith.constant 1 : index
    %c0_42 = arith.constant 0 : index
    %c0_43 = arith.constant 0 : index
    %84 = vector.load %arg6[%c1_41, %c0_42, %c0_43] : memref<3x128x128xbf16, #tpu.memory_space<vmem>>, vector<1x128x128xbf16>
    %85 = vector.shape_cast %84 : vector<1x128x128xbf16> to vector<128x128xbf16>
    %cst_44 = arith.constant dense<0.000000e+00> : vector<16x128xf32>
    %86 = tpu.matmul %76, %85, %cst_44 {dimension_numbers = #tpu.dot_dimension_numbers<[1], [0], [0], [1], [0, 0, 1, 1], [], []>} : vector<16x128xbf16>, vector<128x128xbf16>, vector<16x128xf32> -> vector<16x128xf32>
    %87 = arith.addf %83, %86 : vector<16x128xf32>
    %c2_45 = arith.constant 2 : index
    %c0_46 = arith.constant 0 : index
    %c0_47 = arith.constant 0 : index
    %88 = vector.load %arg6[%c2_45, %c0_46, %c0_47] : memref<3x128x128xbf16, #tpu.memory_space<vmem>>, vector<1x128x128xbf16>
    %89 = vector.shape_cast %88 : vector<1x128x128xbf16> to vector<128x128xbf16>
    %cst_48 = arith.constant dense<0.000000e+00> : vector<16x128xf32>
    %90 = tpu.matmul %80, %89, %cst_48 {dimension_numbers = #tpu.dot_dimension_numbers<[1], [0], [0], [1], [0, 0, 1, 1], [], []>} : vector<16x128xbf16>, vector<128x128xbf16>, vector<16x128xf32> -> vector<16x128xf32>
    %91 = arith.addf %87, %90 : vector<16x128xf32>
    %92 = arith.addf %91, %1 : vector<16x128xf32>
    %93 = vector.shape_cast %92 : vector<16x128xf32> to vector<1x16x128xf32>
    %c0_49 = arith.constant 0 : index
    %c0_50 = arith.constant 0 : index
    %c0_51 = arith.constant 0 : index
    %94 = vector.load %arg7[%c0_49, %c0_50, %c0_51] : memref<1x16x128xf32, #tpu.memory_space<vmem>>, vector<1x16x128xf32>
    tpu.vector_store %arg7[%c0_49, %c0_50, %c0_51], %93 {strides = array<i32>} : memref<1x16x128xf32, #tpu.memory_space<vmem>>, vector<1x16x128xf32>,
    return
  }
  func.func @transform_0(%arg0: i32) -> (i32, i32, i32) {
    %c0_i32 = arith.constant 0 : i32
    %c0_i32_0 = arith.constant 0 : i32
    %c0_i32_1 = arith.constant 0 : i32
    return %arg0, %c0_i32, %c0_i32_0 : i32, i32, i32
  }
  func.func @transform_1(%arg0: i32) -> (i32, i32) {
    %c0_i32 = arith.constant 0 : i32
    %c0_i32_0 = arith.constant 0 : i32
    %c0_i32_1 = arith.constant 0 : i32
    return %c0_i32, %c0_i32_0 : i32, i32
  }
  func.func @transform_2(%arg0: i32) -> (i32, i32) {
    %c0_i32 = arith.constant 0 : i32
    %c0_i32_0 = arith.constant 0 : i32
    %c0_i32_1 = arith.constant 0 : i32
    return %c0_i32, %c0_i32_0 : i32, i32
  }
  func.func @transform_3(%arg0: i32) -> (i32, i32, i32) {
    %c0_i32 = arith.constant 0 : i32
    %c0_i32_0 = arith.constant 0 : i32
    %c0_i32_1 = arith.constant 0 : i32
    %c0_i32_2 = arith.constant 0 : i32
    return %c0_i32, %c0_i32_0, %c0_i32_1 : i32, i32, i32
  }
  func.func @transform_4(%arg0: i32) -> (i32, i32) {
    %c0_i32 = arith.constant 0 : i32
    %c0_i32_0 = arith.constant 0 : i32
    %c0_i32_1 = arith.constant 0 : i32
    return %c0_i32, %c0_i32_0 : i32, i32
  }
  func.func @transform_5(%arg0: i32) -> (i32, i32, i32) {
    %c0_i32 = arith.constant 0 : i32
    %c0_i32_0 = arith.constant 0 : i32
    %c0_i32_1 = arith.constant 0 : i32
    %c0_i32_2 = arith.constant 0 : i32
    return %c0_i32, %c0_i32_0, %c0_i32_1 : i32, i32, i32
  }
  func.func @transform_6(%arg0: i32) -> (i32, i32, i32) {
    %c0_i32 = arith.constant 0 : i32
    %c0_i32_0 = arith.constant 0 : i32
    %c0_i32_1 = arith.constant 0 : i32
    return %arg0, %c0_i32, %c0_i32_0 : i32, i32, i32
  }
}

</mosaic_0001>

<bundles_post_ra>
// kernel: tpu_custom_call.1
= control target key start
LH: loop header
LB: loop body
LE: loop exit
PB: predicated region body
PF: predicated region fallthrough
CT: control target
= control target key end

     0   :  { %11 = vsyncpa [#allocation3], 0  ;;  %s2096_s0 = inlined_call_operand.hbm [shape: f32[2,16,128], index: 0, kind: input, shape index: {}]   ;;  %s2097_s1 = inlined_call_operand.vmem [shape: f32[1,128], index: 1, kind: input, shape index: {}]   ;;  %s2098_s2 = inlined_call_operand.vmem [shape: f32[1,128], index: 2, kind: input, shape index: {}]   ;;  %s2099_s3 = inlined_call_operand.hbm [shape: bf16[3,128,128], index: 3, kind: input, shape index: {}]   ;;  %s2100_s4 = inlined_call_operand.vmem [shape: f32[1,128], index: 4, kind: input, shape index: {}]   ;;  %s2101_s5 = inlined_call_operand.hbm [shape: bf16[3,128,128], index: 5, kind: input, shape index: {}]   ;;  %s2102_s6 = inlined_call_operand.hbm [shape: f32[2,16,128], index: 6, kind: output, shape index: {}]  }
   0x1   :  { %13 = vsyncpa [#allocation3 + $0x1], 0 }
   0x2   :  { %14 = vsyncpa [#allocation6], 0 }
   0x3   :  { %15 = vsyncpa [#allocation4], 0 }
   0x4   :  { %17 = vsyncpa [#allocation4 + $0x1], 0  ;;  %s1737_s21 = smov 0   ;;  %s1739_s22 = smov 0  }
   0x5   :  { %s1741_s23 = smov 0   ;;  %s1743_s24 = smov 0  }
   0x6 LB: > { %s1758_s25 = sadd.s32 4294967295, %s1687_s24   ;;  %s1144_s26 = sadd.s32 4294967294, %s1687_s24   ;;  %s1687_s24 = sphi %s1743_s24, %s2126_s24   ;;  %s1683_s23 = sphi %s1741_s23, %s2125_s23   ;;  %s1679_s22 = sphi %s1739_s22, %s2124_s22   ;;  %s1675_s21 = sphi %s1737_s21, %s2123_s21  }
   0x7   : > { %p43_p0 = scmp.ne.s32.totalorder %s1679_s22, %s1675_s21  ;;  %p2103_p1 = scmp.eq.s32.totalorder %s1758_s25, 0 }
   0x8   : > { %p178_p3 = scmp.eq.s32.totalorder %s1144_s26, 1  ;;  %p1145_p5 = scmp.ge.s32.totalorder %s1687_s24, 1 }
   0x9   : > { %p1767_p4 = por %p2103_p1, %p43_p0  ;;  %p185_p7 = scmp.lt.s32.totalorder %s1687_s24, 3 }
   0xa   : > { %p1772_p6 = por %p178_p3, %p43_p0  ;;  %s1689_s30 = smov [#allocation5]  }
   0xb   : > { %s2106_s27 = scalar_select %p1767_p4, 1, 0 }
   0xc   : > { %s2107_s28 = scalar_select %p1772_p6, 1, 0 }
   0xd   : > { %p1777_p8 = pnand %p1145_p5, %p185_p7  ;;  %s203_s7 = sshll.u32 %s1689_s30, 4  ;;  %s1781_s7 = int_to_ptr.vmem [resolvable:$true] %s203_s7 }
   0xe   : > { %s1690_s9 = smov [#allocation7]   ;;  %s1531_s13 = scalar_lea.hbm %s2099_s3, 3072 }
   0xf   : > { %p1419_p9 = pneg %p1777_p8  ;;  %s219_s10 = sshll.u32 %s1690_s9, 4  ;;  %s1792_s10 = int_to_ptr.vmem [resolvable:$true] %s219_s10 }
  0x10   : > { %p1532_p12 = scmp.ne.s32.totalorder %s2099_s3, %s1531_s13  ;;  %p1538_p5 = scmp.lt.u32.totalorder %s1531_s13, %s2099_s3 }
  0x11   : > { %p1788_p11 = pnand %p1419_p9, %p2103_p1 }
  0x13   : > { %p1533_p13 = pneg %p1788_p11 }
  0x15   : > { %p1534_p0 = pnand %p1533_p13, %p1532_p12 }
  0x17   : > { %p1535_p3 = pneg %p1534_p0 }
  0x19   : > { %p1540_p7 = pnand %p1538_p5, %p1535_p3 }
  0x1b   : > { %1543 = shalt.err (!%p1540_p7)
}
  0x1c   : > { %s1544_s18 = scalar_lea.vmem %s1781_s7, 3072  ;;  %p1552_p2 = scmp.lt.s32.totalorder %s1781_s7, %s1781_s7 }
  0x1d   : > { %p1545_p9 = scmp.ne.s32.totalorder %s1781_s7, %s1544_s18  ;;  %p1553_p12 = scmp.lt.s32.totalorder %s1544_s18, %s1544_s18 }
  0x1f   : > { %p1547_p10 = pnand %p1545_p9, %p1533_p13  ;;  %p1554_p0 = por %p1553_p12, %p1552_p2 }
  0x21   : > { %p1548_p1 = pneg %p1547_p10 }
  0x23   : > { %p1555_p6 = pnand %p1554_p0, %p1548_p1 }
  0x25   : > { %1558 = shalt.err (!%p1555_p6)
}
  0x26   : > { %s1691_s19 = smov 64   ;;  %s1692_s20 = smov 4  }
  0x27   : > { %1422 = dma.hbm_to_vmem [thread:$0]  (!%p1788_p11), %s2099_s3, 3072, %s1781_s7, [#allocation6], %s1691_s19, %s1691_s19, %s1692_s20  }
  0x28   : > { %s1559_s12 = scalar_lea.hbm %s2101_s5, 3072 }
  0x29   : > { %p1560_p2 = scmp.ne.s32.totalorder %s2101_s5, %s1559_s12  ;;  %p1566_p10 = scmp.lt.u32.totalorder %s1559_s12, %s2101_s5 }
  0x2b   : > { %p1562_p1 = pnand %p1560_p2, %p1533_p13 }
  0x2d   : > { %p1563_p6 = pneg %p1562_p1 }
  0x2f   : > { %p1568_p3 = pnand %p1566_p10, %p1563_p6 }
  0x31   : > { %1571 = shalt.err (!%p1568_p3)
}
  0x32   : > { %s1572_s7 = scalar_lea.vmem %s1792_s10, 3072  ;;  %p1580_p12 = scmp.lt.s32.totalorder %s1792_s10, %s1792_s10 }
  0x33   : > { %p1573_p5 = scmp.ne.s32.totalorder %s1792_s10, %s1572_s7  ;;  %p1581_p0 = scmp.lt.s32.totalorder %s1572_s7, %s1572_s7 }
  0x35   : > { %p1575_p7 = pnand %p1573_p5, %p1533_p13  ;;  %p1582_p2 = por %p1581_p0, %p1580_p12 }
  0x37   : > { %p1576_p9 = pneg %p1575_p7 }
  0x39   : > { %p1583_p1 = pnand %p1582_p2, %p1576_p9 }
  0x3b   : > { %1586 = shalt.err (!%p1583_p1)
}
  0x3c   : > { %1425 = dma.hbm_to_vmem [thread:$0]  (!%p1788_p11), %s2101_s5, 3072, %s1792_s10, [#allocation6], %s1691_s19, %s1691_s19, %s1692_s20  }
  0x3d   : > { %s1847_s26 = sadd.s32 1, %s1687_s24   ;;  %s30_s8 = sadd.s32 1, %s1683_s23 }
  0x3e   : > { %s27_s30 = ssub.s32 %s1687_s24, %s1847_s26  ;;  %p37_p13 = scmp.ne.s32.totalorder %s1683_s23, %s1679_s22 }
  0x3f   : > { %p28_p6 = scmp.eq.s32.totalorder %s27_s30, 0  ;;  %p38_p10 = scmp.eq.s32.totalorder %s1687_s24, 0 }
  0x40   : > { %p2110_p3 = scmp.eq.s32.totalorder %s1758_s25, 1  ;;  %p1436_p7 = scmp.lt.s32.totalorder %s1687_s24, 2 }
  0x41   : > { %s1863_s11 = scalar_select %p28_p6, %s1683_s23, %s30_s8  }
  0x42   : > { %p1857_p5 = por %p2110_p3, %p37_p13  ;;  %p39_p9 = por %p38_p10, %p37_p13 }
  0x43   : > { %s233_s12 = sand.u32 1, %s1683_s23   ;;  %s1229_s10 = sshll.u32 %s1687_s24, 8 }
  0x44   : > { %s2111_s9 = scalar_select %p1857_p5, 1, 0 }
  0x45   : > { %s1149_s13 = sshll.u32 %s233_s12, 4  ;;  %s1870_s14 = scalar_lea.hbm %s2096_s0, %s1229_s10 }
  0x46   : > { %s237_s15 = scalar_lea.vmem [#allocation2], %s1149_s13  ;;  %p1874_p11 = pnand %p1436_p7, %p39_p9 }
  0x47   : > { %s244_s16 = sshll.u32 %s237_s15, 4  ;;  %s1878_s17 = scalar_lea.sflag [#allocation3], %s233_s12  ;;  %s1872_s16 = int_to_ptr.vmem [resolvable:$true] %s244_s16 }
  0x48   : > { %s1587_s18 = scalar_lea.hbm %s1870_s14, 256  ;;  %p1589_p0 = pneg %p1874_p11 }
  0x49   : > { %p1588_p12 = scmp.ne.s32.totalorder %s1870_s14, %s1587_s18  ;;  %s1592_s13 = scalar_lea.hbm %s2096_s0, 512 }
  0x4a   : > { %p1593_p13 = scmp.lt.u32.totalorder %s1870_s14, %s2096_s0  ;;  %p1594_p6 = scmp.lt.u32.totalorder %s1592_s13, %s1587_s18 }
  0x4b   : > { %p1590_p2 = pnand %p1589_p0, %p1588_p12  ;;  %p1596_p3 = scmp.lt.u32.totalorder %s1587_s18, %s1870_s14 }
  0x4c   : > { %p1595_p10 = por %p1594_p6, %p1593_p13 }
  0x4d   : > { %p1591_p1 = pneg %p1590_p2 }
  0x4e   : > { %p1597_p7 = por %p1596_p3, %p1595_p10 }
  0x50   : > { %p1598_p9 = pnand %p1597_p7, %p1591_p1 }
  0x52   : > { %1601 = shalt.err (!%p1598_p9)
}
  0x53   : > { %s1602_s12 = scalar_lea.vmem %s1872_s16, 256  ;;  %s1693_s20 = smov [#allocation2]  }
  0x54   : > { %p1603_p12 = scmp.ne.s32.totalorder %s1872_s16, %s1602_s12  ;;  %s1607_s15 = sshll.u32 %s1693_s20, 4  ;;  %s1608_s15 = int_to_ptr.vmem [resolvable:$false] %s1607_s15 }
  0x55   : > { %s1609_s8 = scalar_lea.vmem %s1608_s15, 512  ;;  %p1610_p4 = scmp.lt.s32.totalorder %s1872_s16, %s1608_s15 }
  0x56   : > { %p1605_p2 = pnand %p1603_p12, %p1589_p0  ;;  %p1611_p13 = scmp.lt.s32.totalorder %s1609_s8, %s1602_s12 }
  0x58   : > { %p1606_p5 = pneg %p1605_p2  ;;  %p1612_p6 = por %p1611_p13, %p1610_p4 }
  0x5a   : > { %p1613_p10 = pnand %p1612_p6, %p1606_p5 }
  0x5c   : > { %1616 = shalt.err (!%p1613_p10)
}
  0x5d   : > { %s1694_s18 = smov 128   ;;  %s1695_s30 = smov 8  }
  0x5e   : > { %1429 = dma.hbm_to_vmem [thread:$0]  (!%p1874_p11), %s1870_s14, 256, %s1872_s16, %s1878_s17, %s1694_s18, %s1694_s18, %s1695_s30  }
  0x5f   : > { %256 = sbr.rel (%p1777_p8) target bundleno = 659 (0x293), region = 44  ;;  %s1909_s13 = sand.u32 (!%p1777_p8), 1, %s1679_s22  }
  0x60   : > { %s1153_s10 = sshll.u32 (!%p1777_p8), %s1909_s13, 4  ;;  %s259_s19 = scalar_lea.sflag (!%p1777_p8), [#allocation3], %s1909_s13 }
  0x61   : > { %s1915_s12 = scalar_lea.vmem (!%p1777_p8), [#allocation2], %s1153_s10  ;;  %p2113_p4 = scmp.ne.s32.totalorder (!%p1777_p8), %s2106_s27, 0 }
  0x66   : > { %1662 = dma.done.wait (%p2113_p4), %s259_s19, 256  }
  0x67   : > { %1664 = vsyncadd (%p2113_p4), %s259_s19, 4294967040  ;;  %p2114_p5 = scmp.eq.s32.totalorder %s1758_s25, 0 }
  0x69   : > { %1666 = dma.done.wait (%p2114_p5), [#allocation6], 6144   ;;  %p2115_p8 = pmov %p2114_p5 }
  0x6a   : > { %v1696_v0 = vmov 0.0   ;;  %vm1697_vm0 = vmmov 0   ;;  %v1483_v1 = vld [vmem:[#allocation5 + $0x40] sm:$0xff]   ;;  %v1485_v3 = vld [vmem:[#allocation5 + $0x48] sm:$0xff]   ;;  %v1487_v5 = vld [vmem:[#allocation5 + $0x50] sm:$0xff]   ;;  %v302_v9 = vlaneseq  ;;  %vm1698_vm3 = vmmov 1  }
  0x6b   : > { %1668 = vsyncadd (%p2115_p8), [#allocation6], 4294961152  ;;  %1287 = vmatprep.subr.bf16.mxu0 %v1696_v0  ;;  %1307 = vmatprep.subr.bf16.mxu1 %v1696_v0  ;;  %v1484_v2 = vld [vmem:[#allocation5] sm:$0xff]   ;;  %v1486_v4 = vld [vmem:[#allocation5 + $0x8] sm:$0xff]   ;;  %s298_s20 = scalar_lea.vmem [#allocation8], %s1153_s10  ;;  %s1230_s8 = sshll.u32 %s1758_s25, 8 }
  0x6c   : > { %1303 = vmatprep.mubr.msk.bf16.mxu0 %vm1697_vm0, %v1696_v0  ;;  %1323 = vmatprep.mubr.msk.bf16.mxu1 %vm1697_vm0, %v1696_v0  ;;  %v1488_v6 = vld [vmem:[#allocation5 + $0x10] sm:$0xff]   ;;  %v1489_v7 = vld [vmem:[#allocation5 + $0x58] sm:$0xff]   ;;  %v1491_v10 = vld [vmem:[#allocation5 + $0x60] sm:$0xff]   ;;  %v1938_v12 = vshrl.u32 %v302_v9, 7  ;;  %s1052_s15 = sshll.u32 %s298_s20, 4  ;;  %s2051_s19 = scalar_lea.hbm %s2102_s6, %s1230_s8  ;;  %s2046_s15 = int_to_ptr.vmem [resolvable:$true] %s1052_s15 }
  0x6d   : > { %1288 = vmatpush3.bf16.msra.mxu0 %v1483_v1  ;;  %1308 = vmatpush3.bf16.msra.mxu1 %v1484_v2  ;;  %v1490_v8 = vld [vmem:[#allocation5 + $0x18] sm:$0xff]   ;;  %v1492_v11 = vld [vmem:[#allocation5 + $0x20] sm:$0xff]   ;;  %v1493_v19 = vld [vmem:[#allocation5 + $0x68] sm:$0xff]   ;;  %s1039_s25 = scalar_lea.sflag [#allocation4], %s1909_s13  ;;  %s1617_s10 = scalar_lea.vmem %s2046_s15, 256 }
  0x6e   : > { %1289 = vmatprep.subr.bf16.mxu0 %v1696_v0  ;;  %1309 = vmatprep.subr.bf16.mxu1 %v1696_v0  ;;  %v1942_v13 = vld [vmem:[%s1915_s12] sm:$0xff]  ;;  %v1945_v14 = vld [vmem:[%s1915_s12 + $0x8] sm:$0xff]  ;;  %v309_v23 = vand.u32 15, %v1938_v12  ;;  %vm355_vm1 = vcmp.lt.s32.totalorder %v1938_v12, 1  ;;  %v304_v43 = vadd.s32 8, %v1938_v12  ;;  %vm364_vm5 = vcmp.lt.s32.totalorder %v1938_v12, 7  ;;  %p1618_p11 = scmp.ne.s32.totalorder %s2046_s15, %s1617_s10 }
  0x6f   : > { %v1157_v15 = vld [vmem:[%s2097_s1] ss:$0 sm:$0xff]  ;;  %v1494_v20 = vld [vmem:[#allocation5 + $0x28] sm:$0xff]   ;;  %v1495_v26 = vld [vmem:[#allocation5 + $0x70] sm:$0xff]   ;;  %p2120_p0 = scmp.ne.s32.totalorder %s2111_s9, 0  ;;  %s1699_s12 = smov [#allocation8]  }
  0x70   : > { %v340_v16 = vmul.f32 %v1157_v15, %v1942_v13  ;;  %v341_v17 = vmul.f32 %v1157_v15, %v1945_v14  ;;  %v1158_v18 = vld [vmem:[%s2098_s2] ss:$0 sm:$0xff]  ;;  %v1496_v27 = vld [vmem:[#allocation5 + $0x30] sm:$0xff]   ;;  %vm1231_vm2 = vcmp.ne.s32.totalorder %v309_v23, 0  ;;  %v1497_v29 = vld [vmem:[#allocation5 + $0x78] sm:$0xff]   ;;  %v316_v47 = vand.u32 15, %v304_v43 }
  0x71   : > { %1290 = vmatpush3.bf16.msra.mxu0 %v1485_v3  ;;  %1310 = vmatpush3.bf16.msra.mxu1 %v1486_v4  ;;  %v1498_v31 = vld [vmem:[#allocation5 + $0x38] sm:$0xff]   ;;  %vm1962_vm4 = vmpackc.low %vm1698_vm3, %vm1231_vm2  ;;  %v1499_v35 = vld [vmem:[#allocation5 + $0x80] sm:$0xff]   ;;  %p1619_p1 = pnand %p1618_p11, %p2120_p0  ;;  %s1621_s27 = sshll.u32 %s1699_s12, 4  ;;  %s1622_s27 = int_to_ptr.vmem [resolvable:$false] %s1621_s27 }
  0x72   : > { %1291 = vmatprep.subr.bf16.mxu0 %v1696_v0  ;;  %1311 = vmatprep.subr.bf16.mxu1 %v1696_v0  ;;  %v349_v21 = vadd.f32 %v1158_v18, %v340_v16  ;;  %v350_v22 = vadd.f32 %v1158_v18, %v341_v17  ;;  %v1500_v38 = vld [vmem:[#allocation5 + $0x88] sm:$0xff]   ;;  %v1501_v39 = vld [vmem:[#allocation5 + $0x90] sm:$0xff]   ;;  %v1502_v40 = vld [vmem:[#allocation5 + $0x98] sm:$0xff]   ;;  %vm1232_vm6 = vcmp.ne.s32.totalorder %v316_v47, 15  ;;  %s1623_s29 = scalar_lea.vmem %s1622_s27, 512  ;;  %p1624_p7 = scmp.lt.s32.totalorder %s2046_s15, %s1622_s27 }
  0x73   : > { %v1503_v41 = vld [vmem:[#allocation5 + $0xa0] sm:$0xff]   ;;  %v1504_v42 = vld [vmem:[#allocation5 + $0xa8] sm:$0xff]   ;;  %v1505_v46 = vld [vmem:[#allocation5 + $0xb0] sm:$0xff]   ;;  %p1620_p3 = pneg %p1619_p1  ;;  %p1625_p9 = scmp.lt.s32.totalorder %s1623_s29, %s1617_s10 }
  0x74   : > { %v351_v24 = vmax.f32 %v349_v21, 0.0  ;;  %v352_v25 = vmax.f32 %v350_v22, 0.0  ;;  %v1506_v48 = vld [vmem:[#allocation5 + $0xb8] sm:$0xff]   ;;  %vm1994_vm7 = vmpackc.low %vm1232_vm6, %vm1698_vm3  ;;  %v1507_v53 = vld [vmem:[#allocation7 + $0x40] sm:$0xff]  }
  0x75   : > { %1292 = vmatpush3.bf16.msra.mxu0 %v1487_v5  ;;  %1312 = vmatpush3.bf16.msra.mxu1 %v1488_v6  ;;  %v1509_v54 = vld [vmem:[#allocation7] sm:$0xff]   ;;  %v1508_v55 = vld [vmem:[#allocation7 + $0x48] sm:$0xff]   ;;  %v1510_v57 = vld [vmem:[#allocation7 + $0x50] sm:$0xff]   ;;  %p1626_p12 = por %p1625_p9, %p1624_p7 }
  0x76   : > { %1293 = vmatprep.subr.bf16.mxu0 %v1696_v0  ;;  %1313 = vmatprep.subr.bf16.mxu1 %v1696_v0  ;;  %v353_v28 = vrot.slane %v351_v24, 7  ;;  %v354_v30 = vrot.slane %v352_v25, 7  ;;  %v361_v36 = vpack.c.bf16 %v352_v25, %v351_v24  ;;  %v362_v44 = vrot.slane %v351_v24, 1  ;;  %v1511_v56 = vld [vmem:[#allocation7 + $0x8] sm:$0xff]   ;;  %v1513_v58 = vld [vmem:[#allocation7 + $0x10] sm:$0xff]   ;;  %v1512_v59 = vld [vmem:[#allocation7 + $0x58] sm:$0xff]  }
  0x77   : > { %v363_v45 = vrot.slane %v352_v25, 1  ;;  %v1515_v60 = vld [vmem:[#allocation7 + $0x18] sm:$0xff]   ;;  %v1514_v61 = vld [vmem:[#allocation7 + $0x60] sm:$0xff]   ;;  %v1516_v63 = vld [vmem:[#allocation7 + $0x68] sm:$0xff]   ;;  %p1627_p2 = pnand %p1626_p12, %p1620_p3 }
  0x78   : > { %v356_v33 = vsel %vm355_vm1, %v353_v28, %v354_v30  ;;  %v357_v34 = vsel %vm355_vm1, %v354_v30, %v353_v28  ;;  %v1517_v62 = vld [vmem:[#allocation7 + $0x20] sm:$0xff]   ;;  %v1518_v1 = vld [vmem:[#allocation7 + $0x70] sm:$0xff]   ;;  %v1519_v2 = vld [vmem:[#allocation7 + $0x28] sm:$0xff]  }
  0x79   : > { %1294 = vmatpush3.bf16.msra.mxu0 %v1489_v7  ;;  %1314 = vmatpush3.bf16.msra.mxu1 %v1490_v8  ;;  %v1177_v37 = vpack.c.bf16 %v356_v33, %v357_v34  ;;  %v365_v49 = vsel %vm364_vm5, %v362_v44, %v363_v45  ;;  %v366_v50 = vsel %vm364_vm5, %v363_v45, %v362_v44  ;;  %v1520_v3 = vld [vmem:[#allocation7 + $0x78] sm:$0xff]   ;;  %v1521_v4 = vld [vmem:[#allocation7 + $0x30] sm:$0xff]   ;;  %v1527_v45 = vld [vmem:[#allocation7 + $0xa0] sm:$0xff]  }
  0x7a   : > { %1295 = vmatprep.subr.bf16.mxu0 %v1696_v0  ;;  %1315 = vmatprep.subr.bf16.mxu1 %v1696_v0  ;;  %v1189_v51 = vpack.c.bf16 %v366_v50, %v365_v49  ;;  %v1522_v5 = vld [vmem:[#allocation7 + $0x38] sm:$0xff]   ;;  %v1525_v44 = vld [vmem:[#allocation7 + $0x90] sm:$0xff]  }
  0x7b   : > { %v1526_v12 = vld [vmem:[#allocation7 + $0x98] sm:$0xff]   ;;  %v1529_v47 = vld [vmem:[#allocation7 + $0xb0] sm:$0xff]  }
  0x7c   : > { %v1530_v32 = vld [vmem:[#allocation7 + $0xb8] sm:$0xff]  }
  0x7d   : > { %1296 = vmatpush3.bf16.msra.mxu0 %v1491_v10  ;;  %1316 = vmatpush3.bf16.msra.mxu1 %v1492_v11 }
  0x7e   : > { %1297 = vmatprep.subr.bf16.mxu0 %v1696_v0  ;;  %1317 = vmatprep.subr.bf16.mxu1 %v1696_v0 }
  0x81   : > { %1298 = vmatpush3.bf16.msra.mxu0 %v1493_v19  ;;  %1318 = vmatpush3.bf16.msra.mxu1 %v1494_v20  ;;  %v1191_v20 = vld [vmem:[%s2100_s4] ss:$0 sm:$0xff] }
  0x82   : > { %1299 = vmatprep.subr.bf16.mxu0 %v1696_v0  ;;  %1319 = vmatprep.subr.bf16.mxu1 %v1696_v0 }
  0x85   : > { %1300 = vmatpush3.bf16.msra.mxu0 %v1495_v26  ;;  %1320 = vmatpush3.bf16.msra.mxu1 %v1496_v27 }
  0x86   : > { %1301 = vmatprep.subr.bf16.mxu0 %v1696_v0  ;;  %1321 = vmatprep.subr.bf16.mxu1 %v1696_v0 }
  0x89   : > { %1302 = vmatpush3.bf16.msra.mxu0 %v1497_v29  ;;  %1322 = vmatpush3.bf16.msra.mxu1 %v1498_v31  ;;  %v1523_v31 = vld [vmem:[#allocation7 + $0x80] sm:$0xff]  }
  0x8a   : > { %1327 = vmatprep.subr.bf16.mxu0 %v1696_v0  ;;  %1347 = vmatprep.subr.bf16.mxu1 %v1696_v0 }
  0x8c   : > { %1304 = vmatmul.mubr.bf16.vlgmr.msra.gmra.mrb[0].mxu0 %v361_v36  ;;  %1324 = vmatmul.mubr.msk.bf16.vlgmr.msra.gmra.mrb[0].mxu1 %vm1962_vm4, %v1177_v37 }
  0x8d   : > { %1328 = vmatpush3.bf16.msra.mxu0 %v1499_v35  ;;  %1343 = vmatprep.mubr.msk.bf16.mxu0 %vm1697_vm0, %v1696_v0 }
  0x8e   : > { %1329 = vmatprep.subr.bf16.mxu0 %v1696_v0  ;;  %1363 = vmatprep.mubr.msk.bf16.mxu1 %vm1697_vm0, %v1696_v0 }
  0x8f   : > { %1348 = vmatpush3.bf16.msra.mxu1 %v1507_v53 }
  0x90   : > { %1349 = vmatprep.subr.bf16.mxu1 %v1696_v0 }
  0x91   : > { %1330 = vmatpush3.bf16.msra.mxu0 %v1500_v38 }
  0x92   : > { %1331 = vmatprep.subr.bf16.mxu0 %v1696_v0 }
  0x93   : > { %1350 = vmatpush3.bf16.msra.mxu1 %v1508_v55 }
  0x94   : > { %1351 = vmatprep.subr.bf16.mxu1 %v1696_v0 }
  0x95   : > { %1332 = vmatpush3.bf16.msra.mxu0 %v1501_v39 }
  0x96   : > { %1333 = vmatprep.subr.bf16.mxu0 %v1696_v0 }
  0x97   : > { %1352 = vmatpush3.bf16.msra.mxu1 %v1510_v57 }
  0x98   : > { %1353 = vmatprep.subr.bf16.mxu1 %v1696_v0 }
  0x99   : > { %1334 = vmatpush3.bf16.msra.mxu0 %v1502_v40 }
  0x9a   : > { %1335 = vmatprep.subr.bf16.mxu0 %v1696_v0 }
  0x9b   : > { %1354 = vmatpush3.bf16.msra.mxu1 %v1512_v59 }
  0x9c   : > { %1355 = vmatprep.subr.bf16.mxu1 %v1696_v0 }
  0x9d   : > { %1336 = vmatpush3.bf16.msra.mxu0 %v1503_v41 }
  0x9e   : > { %1337 = vmatprep.subr.bf16.mxu0 %v1696_v0 }
  0x9f   : > { %1356 = vmatpush3.bf16.msra.mxu1 %v1514_v61 }
  0xa0   : > { %1357 = vmatprep.subr.bf16.mxu1 %v1696_v0 }
  0xa1   : > { %1338 = vmatpush3.bf16.msra.mxu0 %v1504_v42  ;;  %v1524_v42 = vld [vmem:[#allocation7 + $0x88] sm:$0xff]  }
  0xa2   : > { %1339 = vmatprep.subr.bf16.mxu0 %v1696_v0 }
  0xa3   : > { %1358 = vmatpush3.bf16.msra.mxu1 %v1516_v63 }
  0xa4   : > { %1359 = vmatprep.subr.bf16.mxu1 %v1696_v0 }
  0xa5   : > { %1340 = vmatpush3.bf16.msra.mxu0 %v1505_v46  ;;  %v1528_v46 = vld [vmem:[#allocation7 + $0xa8] sm:$0xff]  }
  0xa6   : > { %1341 = vmatprep.subr.bf16.mxu0 %v1696_v0 }
  0xa7   : > { %1360 = vmatpush3.bf16.msra.mxu1 %v1518_v1 }
  0xa8   : > { %1361 = vmatprep.subr.bf16.mxu1 %v1696_v0 }
  0xa9   : > { %1342 = vmatpush3.bf16.msra.mxu0 %v1506_v48 }
  0xaa   : > { %1367 = vmatprep.subr.bf16.mxu0 %v1696_v0 }
  0xab   : > { %1362 = vmatpush3.bf16.msra.mxu1 %v1520_v3 }
  0xac   : > { %1344 = vmatmul.mubr.msk.bf16.vlgmr.msra.gmra.mrb[4].mxu0 %vm1994_vm7, %v1189_v51  ;;  %1387 = vmatprep.subr.bf16.mxu1 %v1696_v0 }
  0xad   : > { %1383 = vmatprep.mubr.msk.bf16.mxu0 %vm1697_vm0, %v1696_v0  ;;  %1368 = vmatpush3.bf16.msra.mxu0 %v1509_v54 }
  0xae   : > { %1369 = vmatprep.subr.bf16.mxu0 %v1696_v0 }
  0xb1   : > { %1370 = vmatpush3.bf16.msra.mxu0 %v1511_v56 }
  0xb2   : > { %1371 = vmatprep.subr.bf16.mxu0 %v1696_v0 }
  0xb5   : > { %1372 = vmatpush3.bf16.msra.mxu0 %v1513_v58 }
  0xb6   : > { %1373 = vmatprep.subr.bf16.mxu0 %v1696_v0 }
  0xb9   : > { %1374 = vmatpush3.bf16.msra.mxu0 %v1515_v60 }
  0xba   : > { %1375 = vmatprep.subr.bf16.mxu0 %v1696_v0 }
  0xbd   : > { %1376 = vmatpush3.bf16.msra.mxu0 %v1517_v62 }
  0xbe   : > { %1377 = vmatprep.subr.bf16.mxu0 %v1696_v0 }
  0xc1   : > { %1378 = vmatpush3.bf16.msra.mxu0 %v1519_v2 }
  0xc2   : > { %1379 = vmatprep.subr.bf16.mxu0 %v1696_v0 }
  0xc5   : > { %1380 = vmatpush3.bf16.msra.mxu0 %v1521_v4 }
  0xc6   : > { %1381 = vmatprep.subr.bf16.mxu0 %v1696_v0 }
  0xc9   : > { %1382 = vmatpush3.bf16.msra.mxu0 %v1522_v5 }
 0x15f   : > { %v485_v6 = vpop.f32.mrb[0].mxu0  ;;  %v574_v7 = vpop.f32.mrb[0].mxu1 }
 0x160   : > { %v1305_v8 = vpop.f32.mrb[1].mxu0  ;;  %v575_v9 = vadd.f32 %v574_v7, %v485_v6  ;;  %v1325_v10 = vpop.f32.mrb[1].mxu1 }
 0x161   : > { %v488_v11 = vpop.f32.mrb[2].mxu0  ;;  %v577_v15 = vpop.f32.mrb[2].mxu1 }
 0x162   : > { %v1306_v16 = vpop.f32.mrb[3].mxu0  ;;  %v578_v17 = vadd.f32 %v577_v15, %v488_v11  ;;  %v1326_v18 = vpop.f32.mrb[3].mxu1 }
 0x17f   : > { %v680_v19 = vpop.f32.mrb[4].mxu0 }
 0x180   : > { %v687_v21 = vadd.f32 %v680_v19, %v575_v9  ;;  %v1345_v22 = vpop.f32.mrb[5].mxu0 }
 0x181   : > { %v683_v23 = vpop.f32.mrb[6].mxu0 }
 0x182   : > { %v696_v24 = vadd.f32 %v1191_v20, %v687_v21  ;;  %v688_v25 = vadd.f32 %v683_v23, %v578_v17  ;;  %v1346_v26 = vpop.f32.mrb[7].mxu0 }
 0x184   : > { %v698_v27 = vmax.f32 %v696_v24, 0.0  ;;  %v697_v28 = vadd.f32 %v1191_v20, %v688_v25 }
 0x186   : > { %v699_v29 = vmax.f32 %v697_v28, 0.0  ;;  %v700_v30 = vrot.slane %v698_v27, 7  ;;  %v708_v33 = vrot.slane %v698_v27, 1 }
 0x188   : > { %v701_v34 = vrot.slane %v699_v29, 7  ;;  %v709_v35 = vrot.slane %v699_v29, 1  ;;  %v707_v36 = vpack.c.bf16 %v699_v29, %v698_v27 }
 0x18a   : > { %v702_v37 = vsel %vm355_vm1, %v700_v30, %v701_v34  ;;  %v703_v38 = vsel %vm355_vm1, %v701_v34, %v700_v30  ;;  %v710_v39 = vsel %vm364_vm5, %v708_v33, %v709_v35  ;;  %v711_v40 = vsel %vm364_vm5, %v709_v35, %v708_v33  ;;  %1364 = vmatmul.mubr.bf16.vlgmr.msra.gmra.mrb[4].mxu1 %v707_v36 }
 0x18b   : > { %1388 = vmatpush3.bf16.msra.mxu1 %v1523_v31  ;;  %v1210_v41 = vpack.c.bf16 %v702_v37, %v703_v38  ;;  %1403 = vmatprep.mubr.msk.bf16.mxu1 %vm1697_vm0, %v1696_v0  ;;  %v1222_v43 = vpack.c.bf16 %v711_v40, %v710_v39 }
 0x18c   : > { %1389 = vmatprep.subr.bf16.mxu1 %v1696_v0 }
 0x18d   : > { %1384 = vmatmul.mubr.msk.bf16.vlgmr.msra.gmra.mrb[8].mxu0 %vm1962_vm4, %v1210_v41 }
 0x18f   : > { %1390 = vmatpush3.bf16.msra.mxu1 %v1524_v42 }
 0x190   : > { %1391 = vmatprep.subr.bf16.mxu1 %v1696_v0 }
 0x193   : > { %1392 = vmatpush3.bf16.msra.mxu1 %v1525_v44 }
 0x194   : > { %1393 = vmatprep.subr.bf16.mxu1 %v1696_v0 }
 0x197   : > { %1394 = vmatpush3.bf16.msra.mxu1 %v1526_v12 }
 0x198   : > { %1395 = vmatprep.subr.bf16.mxu1 %v1696_v0 }
 0x19b   : > { %1396 = vmatpush3.bf16.msra.mxu1 %v1527_v45 }
 0x19c   : > { %1397 = vmatprep.subr.bf16.mxu1 %v1696_v0 }
 0x19f   : > { %1398 = vmatpush3.bf16.msra.mxu1 %v1528_v46 }
 0x1a0   : > { %1399 = vmatprep.subr.bf16.mxu1 %v1696_v0 }
 0x1a3   : > { %1400 = vmatpush3.bf16.msra.mxu1 %v1529_v47 }
 0x1a4   : > { %1401 = vmatprep.subr.bf16.mxu1 %v1696_v0 }
 0x1a7   : > { %1402 = vmatpush3.bf16.msra.mxu1 %v1530_v32 }
 0x1aa   : > { %1404 = vmatmul.mubr.msk.bf16.vlgmr.msra.gmra.mrb[8].mxu1 %vm1994_vm7, %v1222_v43 }
 0x25d   : > { %v830_v48 = vpop.f32.mrb[4].mxu1 }
 0x25e   : > { %v1365_v49 = vpop.f32.mrb[5].mxu1 }
 0x25f   : > { %v833_v50 = vpop.f32.mrb[6].mxu1 }
 0x260   : > { %v1366_v51 = vpop.f32.mrb[7].mxu1  ;;  %v919_v53 = vpop.f32.mrb[8].mxu0 }
 0x261   : > { %v920_v54 = vadd.f32 %v919_v53, %v830_v48  ;;  %v1385_v55 = vpop.f32.mrb[9].mxu0 }
 0x262   : > { %v922_v56 = vpop.f32.mrb[10].mxu0 }
 0x263   : > { %v923_v57 = vadd.f32 %v922_v56, %v833_v50  ;;  %v1386_v58 = vpop.f32.mrb[11].mxu0 }
 0x27d   : > { %v1025_v59 = vpop.f32.mrb[8].mxu1 }
 0x27e   : > { %v1032_v0 = vadd.f32 %v1025_v59, %v920_v54  ;;  %v1405_v52 = vpop.f32.mrb[9].mxu1 }
 0x27f   : > { %v1028_v60 = vpop.f32.mrb[10].mxu1 }
 0x280   : > { %v1034_v61 = vadd.f32 %v1032_v0, %v1942_v13  ;;  %v1033_v62 = vadd.f32 %v1028_v60, %v923_v57  ;;  %v1406_v63 = vpop.f32.mrb[11].mxu1 }
 0x282   : > { %1036 = vst [vmem:[%s298_s20] sm:$0xff] %v1034_v61  ;;  %v1035_v1 = vadd.f32 %v1033_v62, %v1945_v14 }
 0x284   : > { %1037 = vst [vmem:[%s298_s20 + $0x8] sm:$0xff] %v1035_v1 }
 0x285   : > { %1630 = shalt.err (!%p1627_p2)
}
 0x286   : > { %s1631_s14 = scalar_lea.hbm %s2051_s19, 256  ;;  %s1635_s17 = scalar_lea.hbm %s2102_s6, 512 }
 0x287   : > { %p1632_p13 = scmp.ne.s32.totalorder %s2051_s19, %s1631_s14  ;;  %p1636_p4 = scmp.lt.u32.totalorder %s2051_s19, %s2102_s6 }
 0x288   : > { %p1637_p5 = scmp.lt.u32.totalorder %s1635_s17, %s1631_s14  ;;  %p1639_p11 = scmp.lt.u32.totalorder %s1631_s14, %s2051_s19 }
 0x289   : > { %p1633_p6 = pnand %p1632_p13, %p2120_p0 }
 0x28a   : > { %p1638_p8 = por %p1637_p5, %p1636_p4 }
 0x28b   : > { %p1634_p10 = pneg %p1633_p6 }
 0x28c   : > { %p1640_p1 = por %p1639_p11, %p1638_p8 }
 0x28e   : > { %p1641_p3 = pnand %p1640_p1, %p1634_p10 }
 0x290   : > { %1644 = shalt.err (!%p1641_p3)
}
 0x291   : > { %s1700_s18 = smov 128   ;;  %s1701_s30 = smov 8  }
 0x292   : > { %1417 = dma.vmem_to_hbm [thread:$0]  (%p2120_p0), %s2046_s15, 256, %s2051_s19, %s1039_s25, %s1700_s18, %s1700_s18, %s1701_s30  }
 0x293 PF: > { %s1067_s10 = sand.u32 1, %s1675_s21   ;;  %p2121_p7 = scmp.ne.s32.totalorder %s2107_s28, 0 }
 0x294   : > { %p2122_p9 = scmp.ge.s32.totalorder %s1687_s24, 2  ;;  %s1068_s12 = scalar_lea.sflag [#allocation4], %s1067_s10 }
 0x296   : > { %p1431_p12 = pnand %p2122_p9, %p2121_p7 }
 0x298   : > { %1670 = dma.done.wait (!%p1431_p12), %s1068_s12, 256  }
 0x299   : > { %1672 = vsyncadd (!%p1431_p12), %s1068_s12, 4294967040  ;;  %p20_p2 = scmp.ge.s32.totalorder %s1847_s26, 4   ;;  %s2123_s21 = smov %s1679_s22 }
 0x29a   : > { %s2124_s22 = smov %s1683_s23  ;;  %s2125_s23 = smov %s1863_s11 }
 0x29b   : > { %s2126_s24 = smov %s1847_s26  ;;  %22 = sbr.rel (!%p20_p2) target bundleno = 6 (0x6), region = 101 }
 0x2a2   :  { %1073 = vsyncpa [#allocation3], 1 }
 0x2a3   :  { %1075 = vsyncpa [#allocation3 + $0x1], 1 }
 0x2a4   :  { %1076 = vsyncpa [#allocation6], 1 }
 0x2a5   :  { %1077 = vsyncpa [#allocation4], 1 }
 0x2a6   :  { %1079 = vsyncpa [#allocation4 + $0x1], 1 }

</bundles_post_ra>
